<compile_context>
chip_gen: v7x
topology: tpu7x:2x2x1
jax: 0.10.0
libtpu: 0.0.40
codegen_flags: <defaults>
</compile_context>

<pallas_src>
import jax
import jax.numpy as jnp
from jax.experimental import pallas as pl
from jax.experimental.pallas import tpu as pltpu

_LANE = 128


def _round_up(x, m):
    return (x + m - 1) // m * m


def _mlp_kernel(x_ref, w1_ref, b1_ref, w2_ref, b2_ref, o_ref):
    """One batch tile, batch on the lane axis.

    x_ref : (in_q,  TB)   state tile (batch-on-lanes, lane-dense)
    w1_ref: (H_pad, in_q) fc1 weight (PyTorch layout, hidden zero-padded)
    b1_ref: (H_pad, 1)    fc1 bias
    w2_ref: (A,     H_pad) fc2 weight
    b2_ref: (A,     1)    fc2 bias
    o_ref : (A,     TB)   q-values tile (lane-dense store)
    """
    # Layer 1: relu(W1 @ x + b1) -> (H_pad, TB).  Biases are (N, 1) VMEM
    # operands broadcast once per block (no per-iteration re-broadcast).
    h = jnp.dot(w1_ref[...], x_ref[...], preferred_element_type=jnp.float32)
    h = jnp.maximum(h + b1_ref[...], 0.0)
    # Layer 2: W2 @ h + b2 -> (A, TB)
    q = jnp.dot(w2_ref[...], h, preferred_element_type=jnp.float32)
    o_ref[...] = (q + b2_ref[...]).astype(o_ref.dtype)


def network_forward(state, w1, b1, w2, b2, *, block_b=1024):
    """Forward pass of `Network` (fc1 -> ReLU -> fc2).

    state: (B, inputQty) float32
    w1:    (30, inputQty)      b1: (30,)        -- PyTorch nn.Linear layout
    w2:    (numActions, 30)    b2: (numActions,)
    returns (B, numActions) float32
    """
    B, in_q = state.shape
    hidden = w1.shape[0]
    num_actions = w2.shape[0]

    # ---- wrapper-side layout plumbing (not compute) -----------------------
    # Pad hidden to a sublane multiple; zero rows/cols leave results unchanged
    # (relu(0 + 0) = 0 contributes nothing to the second matmul).
    h_pad = _round_up(hidden, 32)
    w1_p = jnp.zeros((h_pad, in_q), jnp.float32).at[:hidden, :].set(w1)
    b1_p = jnp.zeros((h_pad, 1), jnp.float32).at[:hidden, 0].set(b1)
    w2_p = jnp.zeros((num_actions, h_pad), jnp.float32).at[:, :hidden].set(w2)
    b2_p = b2.reshape(num_actions, 1).astype(jnp.float32)

    # Batch goes on the lane axis; pad it so every block is full & lane-dense.
    if B >= block_b:
        b_pad, tb = _round_up(B, block_b), block_b
    elif B >= _LANE:
        b_pad = _round_up(B, _LANE)
        tb = b_pad
    else:
        b_pad, tb = B, B  # tiny demo batch: single (masked) block, still correct
    x_t = jnp.zeros((in_q, b_pad), jnp.float32).at[:, :B].set(state.T)

    grid = (b_pad // tb,)
    q_t = pl.pallas_call(
        _mlp_kernel,
        out_shape=jax.ShapeDtypeStruct((num_actions, b_pad), jnp.float32),
        grid_spec=pltpu.PrefetchScalarGridSpec(
            num_scalar_prefetch=0,
            grid=grid,
            in_specs=[
                pl.BlockSpec((in_q, tb), lambda i: (0, i)),          # state tile
                pl.BlockSpec((h_pad, in_q), lambda i: (0, 0)),       # W1 (resident)
                pl.BlockSpec((h_pad, 1), lambda i: (0, 0)),          # b1
                pl.BlockSpec((num_actions, h_pad), lambda i: (0, 0)),# W2
                pl.BlockSpec((num_actions, 1), lambda i: (0, 0)),    # b2
            ],
            out_specs=pl.BlockSpec((num_actions, tb), lambda i: (0, i)),
        ),
        compiler_params=pltpu.CompilerParams(
            # batch tiles are independent -> pipeline + shard across v7x cores
            dimension_semantics=("parallel",),
        ),
    )(x_t, w1_p, b1_p, w2_p, b2_p)

    # back to PyTorch-facing layout
    return q_t[:, :B].T


def network_forward_ref(state, w1, b1, w2, b2):
    """Plain-XLA reference (also the right choice for tiny batches)."""
    h = jnp.maximum(state @ w1.T + b1, 0.0)
    return h @ w2.T + b2


def init_params(key, input_qty, num_actions, hidden=30):
    """nn.Linear default init (uniform +-1/sqrt(fan_in)), PyTorch layout."""
    k1, k2, k3, k4 = jax.random.split(key, 4)
    bound1 = 1.0 / jnp.sqrt(float(input_qty))
    bound2 = 1.0 / jnp.sqrt(float(hidden))
    w1 = jax.random.uniform(k1, (hidden, input_qty), jnp.float32, -bound1, bound1)
    b1 = jax.random.uniform(k2, (hidden,), jnp.float32, -bound1, bound1)
    w2 = jax.random.uniform(k3, (num_actions, hidden), jnp.float32, -bound2, bound2)
    b2 = jax.random.uniform(k4, (num_actions,), jnp.float32, -bound2, bound2)
    return w1, b1, w2, b2


if __name__ == "__main__":
    input_qty = 4
    num_actions = 3

    key = jax.random.PRNGKey(0)
    k_params, k_small, k_big = jax.random.split(key, 3)
    w1, b1, w2, b2 = init_params(k_params, input_qty, num_actions)

    # Small demo batch (matches the original toy usage).
    state_small = jax.random.normal(k_small, (8, input_qty), jnp.float32)
    q_small = jax.block_until_ready(network_forward(state_small, w1, b1, w2, b2))
    ref_small = network_forward_ref(state_small, w1, b1, w2, b2)
    assert q_small.shape == (8, num_actions)
    assert jnp.allclose(q_small, ref_small, atol=1e-5, rtol=1e-5)

    # Larger batch exercises the tiled, pipelined, "parallel" grid path.
    state_big = jax.random.normal(k_big, (2048, input_qty), jnp.float32)
    q_big = jax.block_until_ready(
        network_forward(state_big, w1, b1, w2, b2, block_b=1024))
    ref_big = network_forward_ref(state_big, w1, b1, w2, b2)
    assert q_big.shape == (2048, num_actions)
    assert jnp.allclose(q_big, ref_big, atol=1e-5, rtol=1e-5)

    print("KERNEL_OK")
</pallas_src>

<mosaic_0001>
module attributes {stable_mosaic.version = 11 : i64} {
  func.func @_mlp_kernel(%arg0: i32, %arg1: memref<4x8xf32, #tpu.memory_space<vmem>>, %arg2: memref<32x4xf32, #tpu.memory_space<vmem>>, %arg3: memref<32x1xf32, #tpu.memory_space<vmem>>, %arg4: memref<3x32xf32, #tpu.memory_space<vmem>>, %arg5: memref<3x1xf32, #tpu.memory_space<vmem>>, %arg6: memref<3x8xf32, #tpu.memory_space<vmem>>) attributes {dimension_semantics = [#tpu.dimension_semantics<parallel>], iteration_bounds = array<i64: 1>, scalar_prefetch = 0 : i64, scratch_operands = 0 : i64, tpu.core_type = #tpu.core_type<tc>, window_params = [{transform_indices = @transform_0, window_bounds = array<i64: 4, 8>}, {pipeline_mode = #tpu.pipeline_mode<synchronous>, transform_indices = @transform_1, window_bounds = array<i64: 32, 4>}, {pipeline_mode = #tpu.pipeline_mode<synchronous>, transform_indices = @transform_2, window_bounds = array<i64: 32, 1>}, {pipeline_mode = #tpu.pipeline_mode<synchronous>, transform_indices = @transform_3, window_bounds = array<i64: 3, 32>}, {pipeline_mode = #tpu.pipeline_mode<synchronous>, transform_indices = @transform_4, window_bounds = array<i64: 3, 1>}, {transform_indices = @transform_5, window_bounds = array<i64: 3, 8>}]} {
    %c0 = arith.constant 0 : index
    %c0_0 = arith.constant 0 : index
    %0 = vector.load %arg2[%c0, %c0_0] : memref<32x4xf32, #tpu.memory_space<vmem>>, vector<32x4xf32>
    %c0_1 = arith.constant 0 : index
    %c0_2 = arith.constant 0 : index
    %1 = vector.load %arg1[%c0_1, %c0_2] : memref<4x8xf32, #tpu.memory_space<vmem>>, vector<4x8xf32>
    %cst = arith.constant dense<0.000000e+00> : vector<32x8xf32>
    %2 = tpu.matmul %0, %1, %cst {dimension_numbers = #tpu.dot_dimension_numbers<[1], [0], [0], [1], [0, 0, 1, 1], [], []>} : vector<32x4xf32>, vector<4x8xf32>, vector<32x8xf32> -> vector<32x8xf32>
    %c0_3 = arith.constant 0 : index
    %c0_4 = arith.constant 0 : index
    %3 = vector.load %arg3[%c0_3, %c0_4] : memref<32x1xf32, #tpu.memory_space<vmem>>, vector<32x1xf32>
    %4 = vector.broadcast %3 : vector<32x1xf32> to vector<32x8xf32>
    %5 = arith.addf %2, %4 : vector<32x8xf32>
    %cst_5 = arith.constant 0.000000e+00 : f32
    %6 = vector.broadcast %cst_5 : f32 to vector<32x8xf32>
    %7 = arith.maximumf %5, %6 : vector<32x8xf32>
    %c0_6 = arith.constant 0 : index
    %c0_7 = arith.constant 0 : index
    %8 = vector.load %arg4[%c0_6, %c0_7] : memref<3x32xf32, #tpu.memory_space<vmem>>, vector<3x32xf32>
    %cst_8 = arith.constant dense<0.000000e+00> : vector<3x8xf32>
    %9 = tpu.matmul %8, %7, %cst_8 {dimension_numbers = #tpu.dot_dimension_numbers<[1], [0], [0], [1], [0, 0, 1, 1], [], []>} : vector<3x32xf32>, vector<32x8xf32>, vector<3x8xf32> -> vector<3x8xf32>
    %c0_9 = arith.constant 0 : index
    %c0_10 = arith.constant 0 : index
    %10 = vector.load %arg5[%c0_9, %c0_10] : memref<3x1xf32, #tpu.memory_space<vmem>>, vector<3x1xf32>
    %11 = vector.broadcast %10 : vector<3x1xf32> to vector<3x8xf32>
    %12 = arith.addf %9, %11 : vector<3x8xf32>
    %c0_11 = arith.constant 0 : index
    %c0_12 = arith.constant 0 : index
    %13 = vector.load %arg6[%c0_11, %c0_12] : memref<3x8xf32, #tpu.memory_space<vmem>>, vector<3x8xf32>
    tpu.vector_store %arg6[%c0_11, %c0_12], %12 {strides = array<i32>} : memref<3x8xf32, #tpu.memory_space<vmem>>, vector<3x8xf32>,
    return
  }
  func.func @transform_0(%arg0: i32) -> (i32, i32) {
    %c0_i32 = arith.constant 0 : i32
    %c0_i32_0 = arith.constant 0 : i32
    return %c0_i32, %arg0 : i32, i32
  }
  func.func @transform_1(%arg0: i32) -> (i32, i32) {
    %c0_i32 = arith.constant 0 : i32
    %c0_i32_0 = arith.constant 0 : i32
    %c0_i32_1 = arith.constant 0 : i32
    return %c0_i32, %c0_i32_0 : i32, i32
  }
  func.func @transform_2(%arg0: i32) -> (i32, i32) {
    %c0_i32 = arith.constant 0 : i32
    %c0_i32_0 = arith.constant 0 : i32
    %c0_i32_1 = arith.constant 0 : i32
    return %c0_i32, %c0_i32_0 : i32, i32
  }
  func.func @transform_3(%arg0: i32) -> (i32, i32) {
    %c0_i32 = arith.constant 0 : i32
    %c0_i32_0 = arith.constant 0 : i32
    %c0_i32_1 = arith.constant 0 : i32
    return %c0_i32, %c0_i32_0 : i32, i32
  }
  func.func @transform_4(%arg0: i32) -> (i32, i32) {
    %c0_i32 = arith.constant 0 : i32
    %c0_i32_0 = arith.constant 0 : i32
    %c0_i32_1 = arith.constant 0 : i32
    return %c0_i32, %c0_i32_0 : i32, i32
  }
  func.func @transform_5(%arg0: i32) -> (i32, i32) {
    %c0_i32 = arith.constant 0 : i32
    %c0_i32_0 = arith.constant 0 : i32
    return %c0_i32, %arg0 : i32, i32
  }
}

</mosaic_0001>

<bundles_post_ra>
// kernel: tpu_custom_call.1
= control target key start
LH: loop header
LB: loop body
LE: loop exit
PB: predicated region body
PF: predicated region fallthrough
CT: control target
= control target key end

     0   :  { %vm63_vm0 = vcmask 1043456   ;;  %vm50_vm1 = vcmask 31744   ;;  %v325_v5 = vmov 0   ;;  %s409_s0 = inlined_call_operand.vmem [shape: f32[4,8], index: 0, kind: input, shape index: {}]   ;;  %s410_s1 = inlined_call_operand.vmem [shape: f32[32,4], index: 1, kind: input, shape index: {}]   ;;  %s411_s2 = inlined_call_operand.vmem [shape: f32[32,1], index: 2, kind: input, shape index: {}]   ;;  %s412_s3 = inlined_call_operand.vmem [shape: f32[3,32], index: 3, kind: input, shape index: {}]   ;;  %s413_s4 = inlined_call_operand.vmem [shape: f32[3,1], index: 4, kind: input, shape index: {}]   ;;  %s414_s5 = inlined_call_operand.hbm [shape: f32[3,8], index: 5, kind: output, shape index: {}]  }
   0x1   :  { %v25_v0 = vld [vmem:[%s409_s0] sm:$0xf]  ;;  %v22_v2 = vld [vmem:[%s410_s1 + $0x8] sm:$0xff]  ;;  %v23_v3 = vld [vmem:[%s410_s1 + $0x10] sm:$0xff]  ;;  %299 = vset.pattern.permute.xlu0 %v325_v5 }
   0x2   :  { %v21_v1 = vld [vmem:[%s410_s1] sm:$0xff]  ;;  %269 = vmatprep.subr.msk.mxu0 %vm63_vm0, %v25_v0  ;;  %v28_v6 = vld [vmem:[%s411_s2 + $0x10] sm:$0xff] }
   0x3   :  { %271 = vmatprep.mubr.msk.f32.mxu0 %vm50_vm1, %v21_v1  ;;  %v26_v4 = vld [vmem:[%s411_s2] sm:$0xff]  ;;  %270 = vmatpush3.msk.msra.mxu0 %vm63_vm0, %v25_v0 }
   0x4   :  { %272 = vmatmul.mubr.msk.f32.vlgmr.msra.gmra.mrb[0].mxu0 %vm50_vm1, %v22_v2  ;;  %32 = vperm.xlu0 %299, %v26_v4  }
   0x5   :  { %10 = vsyncpa [#allocation3], 0  ;;  %274 = vmatprep.mubr.msk.f32.mxu0 %vm50_vm1, %v23_v3  ;;  %v24_v7 = vld [vmem:[%s410_s1 + $0x18] sm:$0xff]  ;;  %v27_v8 = vld [vmem:[%s411_s2 + $0x8] sm:$0xff]  ;;  %300 = vset.pattern.permute.xlu1 %v325_v5  ;;  %v326_v11 = vmov 0.0|0.0   ;;  %vm327_vm2 = vmmov 0  }
   0x6   :  { %42 = vperm.xlu1 %300, %v28_v6   ;;  %v29_v9 = vld [vmem:[%s411_s2 + $0x18] sm:$0xff]  ;;  %v157_v10 = vld [vmem:[%s413_s4] sm:$0x7]  ;;  %288 = vmatprep.subr.bf16.mxu1 %v326_v11  ;;  %v328_v12 = vmov 0.0   ;;  %vm163_vm3 = vcmask 261120   ;;  %s329_s4 = smov [#allocation2]  }
   0x7   :  { %285 = vmatprep.mubr.msk.f32.mxu1 %vm327_vm2, %v328_v12  ;;  %v156_v31 = vld [vmem:[%s412_s3] sm:$0x7]  ;;  %s245_s12 = sshll.u32 %s329_s4, 4  ;;  %vm237_vm4 = vcmask 59392   ;;  %s246_s12 = int_to_ptr.vmem [resolvable:$true] %s245_s12 }
   0x8   :  { %275 = vmatmul.mubr.msk.f32.gmra.mrb[2].mxu0 %vm50_vm1, %v24_v7  ;;  %37 = vperm.xlu0 %299, %v27_v8   ;;  %s301_s13 = scalar_lea.vmem %s246_s12, 64  ;;  %p306_p1 = scmp.lt.s32.totalorder %s246_s12, %s246_s12 }
   0x9   :  { %p302_p0 = scmp.ne.s32.totalorder %s246_s12, %s301_s13  ;;  %p307_p2 = scmp.lt.s32.totalorder %s301_s13, %s301_s13 }
   0xa   :  { %47 = vperm.xlu1 %300, %v29_v9  }
   0xb   :  { %p308_p3 = por %p307_p2, %p306_p1 }
   0xc   :  { %160 = vperm.xlu0 %299, %v157_v10  }
   0xd   :  { %p309_p4 = pnand %p308_p3, %p302_p0 }
  0x83   :  { %v33_v13 = vpop.permute.xlu0 %32 }
  0x85   :  { %v43_v14 = vpop.permute.xlu1 %42 }
  0x87   :  { %v38_v15 = vpop.permute.xlu0 %37 }
  0x89   :  { %v48_v21 = vpop.permute.xlu1 %47 }
  0x8b   :  { %v161_v32 = vpop.permute.xlu0 %160 }
  0xd7   :  { %v273_v16 = vpop.f32.mrb[0].mxu0 }
  0xd8   :  { %v139_v17 = vadd.f32 %v273_v16, %v38_v15  ;;  %v133_v18 = vpop.f32.mrb[1].mxu0 }
  0xd9   :  { %v134_v19 = vadd.f32 %v133_v18, %v33_v13 }
  0xda   :  { %v153_v20 = vmax.f32 %v139_v17, 0.0 }
  0xdb   :  { %v152_v22 = vmax.f32 %v134_v19, 0.0  ;;  %v276_v23 = vpop.f32.mrb[2].mxu0 }
  0xdc   :  { %v149_v24 = vadd.f32 %v276_v23, %v48_v21  ;;  %v143_v25 = vpop.f32.mrb[3].mxu0 }
  0xdd   :  { %v144_v26 = vadd.f32 %v143_v25, %v43_v14  ;;  %v289_v27 = vpack.c.bf16 %v153_v20, %v152_v22 }
  0xde   :  { %v155_v28 = vmax.f32 %v149_v24, 0.0 }
  0xdf   :  { %v154_v29 = vmax.f32 %v144_v26, 0.0  ;;  %290 = vmatpush3.bf16.msra.mxu1 %v289_v27 }
  0xe0   :  { %291 = vmatprep.subr.bf16.mxu1 %v326_v11 }
  0xe1   :  { %v292_v30 = vpack.c.bf16 %v155_v28, %v154_v29 }
  0xe3   :  { %293 = vmatpush3.bf16.msra.mxu1 %v292_v30 }
  0xe6   :  { %286 = vmatmul.mubr.msk.f32.vlgmr.msra.gmra.mrb[0].mxu1 %vm163_vm3, %v156_v31 }
 0x1b9   :  { %v233_v33 = vpop.f32.mrb[0].mxu1 }
 0x1ba   :  { %v234_v34 = vadd.f32 %v233_v33, %v161_v32  ;;  %v287_v35 = vpop.f32.mrb[1].mxu1 }
 0x1bc   :  { %238 = vst.msk [vmem:[#allocation2] sm:$0x7] %vm237_vm4, %v234_v34 }
 0x1bd   :  { %312 = shalt.err (!%p309_p4)
}
 0x1be   :  { %s313_s15 = scalar_lea.hbm %s414_s5, 64 }
 0x1bf   :  { %p314_p5 = scmp.ne.s32.totalorder %s414_s5, %s313_s15  ;;  %p317_p6 = scmp.lt.u32.totalorder %s313_s15, %s414_s5 }
 0x1c1   :  { %p319_p7 = pnand %p317_p6, %p314_p5 }
 0x1c3   :  { %322 = shalt.err (!%p319_p7)
}
 0x1c4   :  { %248 = dma.vmem_to_hbm [thread:$0]  %s246_s12, 64, %s414_s5, [#allocation3]  }
 0x1c5   :  { %323 = dma.done.wait [#allocation3], 64  }
 0x1c6   :  { %324 = vsyncadd [#allocation3], 4294967232 }
 0x1c7   :  { %252 = vsyncpa [#allocation3], 1 }

</bundles_post_ra>
